<compile_context>
chip_gen: v7x
topology: tpu7x:2x2x1
jax: 0.10.0
libtpu: 0.0.40
codegen_flags: <defaults>
</compile_context>

<pallas_src>
import functools
import math

import jax
import jax.numpy as jnp
from jax.experimental import pallas as pl
from jax.experimental.pallas import tpu as pltpu

LN2 = math.log(2.0)


def _shifted_softplus(x):
    # Numerically-safe, single-branch softplus(x) - ln(2):
    #   softplus(x) = max(x, 0) + log1p(exp(-|x|))
    return jnp.maximum(x, 0.0) + jnp.log1p(jnp.exp(-jnp.abs(x))) - LN2


def _residual_kernel(x_ref, w1_ref, b1_ref, w2_ref, b2_ref, o_ref):
    x = x_ref[...].astype(jnp.float32)
    # pre-activation -> linear1
    y = _shifted_softplus(x)
    y = jnp.dot(y.astype(w1_ref.dtype), w1_ref[...],
                preferred_element_type=jnp.float32)
    y = y + b1_ref[...].astype(jnp.float32)
    # pre-activation -> linear2
    y = _shifted_softplus(y)
    y = jnp.dot(y.astype(w2_ref.dtype), w2_ref[...],
                preferred_element_type=jnp.float32)
    y = y + b2_ref[...].astype(jnp.float32)
    # residual add in f32, cast on store
    o_ref[...] = (x + y).astype(o_ref.dtype)


def _round_up(x, m):
    return ((x + m - 1) // m) * m


@functools.partial(jax.jit, static_argnames=("block_n", "matmul_dtype"))
def residual_forward(x, w1, b1, w2, b2, *, block_n=512, matmul_dtype=None):
    """x: [N, F]; w1/w2: [F, F] (PyTorch [out, in] convention); b1/b2: [F].

    matmul_dtype: None -> f32 matmul operands; jnp.bfloat16 -> bf16 operands
    (f32 accumulate), the fast path on v6e/v7x MXUs.
    """
    N, F = x.shape
    f_pad = _round_up(F, 128)                       # lane-dense feature axis
    block_n = max(8, _round_up(int(block_n), 8))    # sublane-aligned row tile
    block_n = min(block_n, _round_up(N, 8))
    n_pad = _round_up(N, block_n)                   # no ragged last tile

    w_dtype = jnp.dtype(matmul_dtype) if matmul_dtype is not None else jnp.float32

    def prep_w(w):
        wt = jnp.asarray(w, jnp.float32).T          # [in, out] so kernel does plain x @ W
        wt = jnp.pad(wt, ((0, f_pad - F), (0, f_pad - F)))
        return wt.astype(w_dtype)

    def prep_b(b):
        b = jnp.asarray(b, jnp.float32).reshape(1, F)
        return jnp.pad(b, ((0, 0), (0, f_pad - F)))

    x_p = jnp.pad(x, ((0, n_pad - N), (0, f_pad - F)))

    grid = (n_pad // block_n,)
    out = pl.pallas_call(
        _residual_kernel,
        out_shape=jax.ShapeDtypeStruct((n_pad, f_pad), x.dtype),
        grid_spec=pltpu.PrefetchScalarGridSpec(
            num_scalar_prefetch=0,
            grid=grid,
            in_specs=[
                pl.BlockSpec((block_n, f_pad), lambda i: (i, 0)),  # x tile
                pl.BlockSpec((f_pad, f_pad), lambda i: (0, 0)),    # W1^T (grid-invariant)
                pl.BlockSpec((1, f_pad), lambda i: (0, 0)),        # b1
                pl.BlockSpec((f_pad, f_pad), lambda i: (0, 0)),    # W2^T (grid-invariant)
                pl.BlockSpec((1, f_pad), lambda i: (0, 0)),        # b2
            ],
            out_specs=pl.BlockSpec((block_n, f_pad), lambda i: (i, 0)),
        ),
        compiler_params=pltpu.CompilerParams(
            dimension_semantics=("parallel",),      # megacore sharding on v7x
            vmem_limit_bytes=64 * 1024 * 1024,
        ),
    )(x_p, prep_w(w1), prep_b(b1), prep_w(w2), prep_b(b2))
    return out[:N, :F]


def _orthogonal(key, n, dtype=jnp.float32):
    """Deterministic orthogonal init (matches nn.init.orthogonal_ semantics)."""
    a = jax.random.normal(key, (n, n), dtype=jnp.float32)
    q, r = jnp.linalg.qr(a)
    q = q * jnp.sign(jnp.diag(r))[None, :]
    return q.astype(dtype)


def make_residual_params(num_features, key, bias=True, zero_init=True):
    """Returns (w1, b1, w2, b2) with PyTorch Linear convention w: [out, in]."""
    k1, k2 = jax.random.split(key)
    w1 = _orthogonal(k1, num_features)
    if zero_init:
        w2 = jnp.zeros((num_features, num_features), jnp.float32)
    else:
        w2 = _orthogonal(k2, num_features)
    b1 = jnp.zeros((num_features,), jnp.float32)
    b2 = jnp.zeros((num_features,), jnp.float32)
    del bias  # bias=True -> zeros per reset_parameters; bias=False == zeros here too.
    return w1, b1, w2, b2


def residual_reference(x, w1, b1, w2, b2):
    """Pure-JAX f32 reference with PyTorch Linear convention (w: [out, in])."""
    y = _shifted_softplus(x)
    y = y @ w1.T + b1
    y = _shifted_softplus(y)
    y = y @ w2.T + b2
    return x + y


if __name__ == "__main__":
    N, F = 16, 32  # 16 atoms, 32-dim feature space (small demo shapes)
    key = jax.random.PRNGKey(0)
    kx, kp1, kp2 = jax.random.split(key, 3)

    x = jax.random.normal(kx, (N, F), dtype=jnp.float32)

    # Default module config: bias=True, zero_init=True (identity mapping at init).
    w1, b1, w2, b2 = make_residual_params(F, kp1, bias=True, zero_init=True)
    out = jax.block_until_ready(residual_forward(x, w1, b1, w2, b2))
    ref = residual_reference(x, w1, b1, w2, b2)
    assert jnp.allclose(out, ref, atol=1e-5, rtol=1e-5)

    # Non-trivial variant (zero_init=False) exercises the full compute path.
    w1b, b1b, w2b, b2b = make_residual_params(F, kp2, bias=True, zero_init=False)
    out2 = jax.block_until_ready(residual_forward(x, w1b, b1b, w2b, b2b))
    ref2 = residual_reference(x, w1b, b1b, w2b, b2b)
    assert jnp.allclose(out2, ref2, atol=1e-4, rtol=1e-4)

    # bf16 matmul-operand fast path (v6e/v7x); f32 accumulate -> loose tolerance.
    out3 = jax.block_until_ready(
        residual_forward(x, w1b, b1b, w2b, b2b, matmul_dtype=jnp.bfloat16))
    assert jnp.allclose(out3, ref2, atol=3e-2, rtol=3e-2)

    print("KERNEL_OK")
</pallas_src>

<mosaic_0001>
module attributes {stable_mosaic.version = 11 : i64} {
  func.func @_residual_kernel(%arg0: i32, %arg1: memref<16x128xf32, #tpu.memory_space<vmem>>, %arg2: memref<128x128xf32, #tpu.memory_space<vmem>>, %arg3: memref<1x128xf32, #tpu.memory_space<vmem>>, %arg4: memref<128x128xf32, #tpu.memory_space<vmem>>, %arg5: memref<1x128xf32, #tpu.memory_space<vmem>>, %arg6: memref<16x128xf32, #tpu.memory_space<vmem>>) attributes {dimension_semantics = [#tpu.dimension_semantics<parallel>], iteration_bounds = array<i64: 1>, scalar_prefetch = 0 : i64, scratch_operands = 0 : i64, tpu.core_type = #tpu.core_type<tc>, window_params = [{transform_indices = @transform_0, window_bounds = array<i64: 16, 128>}, {pipeline_mode = #tpu.pipeline_mode<synchronous>, transform_indices = @transform_1, window_bounds = array<i64: 128, 128>}, {pipeline_mode = #tpu.pipeline_mode<synchronous>, transform_indices = @transform_2, window_bounds = array<i64: 1, 128>}, {pipeline_mode = #tpu.pipeline_mode<synchronous>, transform_indices = @transform_3, window_bounds = array<i64: 128, 128>}, {pipeline_mode = #tpu.pipeline_mode<synchronous>, transform_indices = @transform_4, window_bounds = array<i64: 1, 128>}, {transform_indices = @transform_5, window_bounds = array<i64: 16, 128>}]} {
    %c0 = arith.constant 0 : index
    %c0_0 = arith.constant 0 : index
    %0 = vector.load %arg1[%c0, %c0_0] : memref<16x128xf32, #tpu.memory_space<vmem>>, vector<16x128xf32>
    %cst = arith.constant 0.000000e+00 : f32
    %1 = vector.broadcast %cst : f32 to vector<16x128xf32>
    %2 = arith.maximumf %0, %1 : vector<16x128xf32>
    %3 = math.absf %0 : vector<16x128xf32>
    %cst_1 = arith.constant 0.000000e+00 : f32
    %4 = vector.broadcast %cst_1 : f32 to vector<16x128xf32>
    %5 = arith.subf %4, %3 : vector<16x128xf32>
    %6 = math.exp %5 : vector<16x128xf32>
    %7 = math.log1p %6 : vector<16x128xf32>
    %8 = arith.addf %2, %7 : vector<16x128xf32>
    %cst_2 = arith.constant 0.693147182 : f32
    %9 = vector.broadcast %cst_2 : f32 to vector<16x128xf32>
    %10 = arith.subf %8, %9 : vector<16x128xf32>
    %c0_3 = arith.constant 0 : index
    %c0_4 = arith.constant 0 : index
    %11 = vector.load %arg2[%c0_3, %c0_4] : memref<128x128xf32, #tpu.memory_space<vmem>>, vector<128x128xf32>
    %cst_5 = arith.constant dense<0.000000e+00> : vector<16x128xf32>
    %12 = tpu.matmul %10, %11, %cst_5 {dimension_numbers = #tpu.dot_dimension_numbers<[1], [0], [0], [1], [0, 0, 1, 1], [], []>} : vector<16x128xf32>, vector<128x128xf32>, vector<16x128xf32> -> vector<16x128xf32>
    %c0_6 = arith.constant 0 : index
    %c0_7 = arith.constant 0 : index
    %13 = vector.load %arg3[%c0_6, %c0_7] : memref<1x128xf32, #tpu.memory_space<vmem>>, vector<1x128xf32>
    %14 = vector.broadcast %13 : vector<1x128xf32> to vector<16x128xf32>
    %15 = arith.addf %12, %14 : vector<16x128xf32>
    %cst_8 = arith.constant 0.000000e+00 : f32
    %16 = vector.broadcast %cst_8 : f32 to vector<16x128xf32>
    %17 = arith.maximumf %15, %16 : vector<16x128xf32>
    %18 = math.absf %15 : vector<16x128xf32>
    %cst_9 = arith.constant 0.000000e+00 : f32
    %19 = vector.broadcast %cst_9 : f32 to vector<16x128xf32>
    %20 = arith.subf %19, %18 : vector<16x128xf32>
    %21 = math.exp %20 : vector<16x128xf32>
    %22 = math.log1p %21 : vector<16x128xf32>
    %23 = arith.addf %17, %22 : vector<16x128xf32>
    %cst_10 = arith.constant 0.693147182 : f32
    %24 = vector.broadcast %cst_10 : f32 to vector<16x128xf32>
    %25 = arith.subf %23, %24 : vector<16x128xf32>
    %c0_11 = arith.constant 0 : index
    %c0_12 = arith.constant 0 : index
    %26 = vector.load %arg4[%c0_11, %c0_12] : memref<128x128xf32, #tpu.memory_space<vmem>>, vector<128x128xf32>
    %cst_13 = arith.constant dense<0.000000e+00> : vector<16x128xf32>
    %27 = tpu.matmul %25, %26, %cst_13 {dimension_numbers = #tpu.dot_dimension_numbers<[1], [0], [0], [1], [0, 0, 1, 1], [], []>} : vector<16x128xf32>, vector<128x128xf32>, vector<16x128xf32> -> vector<16x128xf32>
    %c0_14 = arith.constant 0 : index
    %c0_15 = arith.constant 0 : index
    %28 = vector.load %arg5[%c0_14, %c0_15] : memref<1x128xf32, #tpu.memory_space<vmem>>, vector<1x128xf32>
    %29 = vector.broadcast %28 : vector<1x128xf32> to vector<16x128xf32>
    %30 = arith.addf %27, %29 : vector<16x128xf32>
    %31 = arith.addf %0, %30 : vector<16x128xf32>
    %c0_16 = arith.constant 0 : index
    %c0_17 = arith.constant 0 : index
    %32 = vector.load %arg6[%c0_16, %c0_17] : memref<16x128xf32, #tpu.memory_space<vmem>>, vector<16x128xf32>
    tpu.vector_store %arg6[%c0_16, %c0_17], %31 {strides = array<i32>} : memref<16x128xf32, #tpu.memory_space<vmem>>, vector<16x128xf32>,
    return
  }
  func.func @transform_0(%arg0: i32) -> (i32, i32) {
    %c0_i32 = arith.constant 0 : i32
    %c0_i32_0 = arith.constant 0 : i32
    return %arg0, %c0_i32 : i32, i32
  }
  func.func @transform_1(%arg0: i32) -> (i32, i32) {
    %c0_i32 = arith.constant 0 : i32
    %c0_i32_0 = arith.constant 0 : i32
    %c0_i32_1 = arith.constant 0 : i32
    return %c0_i32, %c0_i32_0 : i32, i32
  }
  func.func @transform_2(%arg0: i32) -> (i32, i32) {
    %c0_i32 = arith.constant 0 : i32
    %c0_i32_0 = arith.constant 0 : i32
    %c0_i32_1 = arith.constant 0 : i32
    return %c0_i32, %c0_i32_0 : i32, i32
  }
  func.func @transform_3(%arg0: i32) -> (i32, i32) {
    %c0_i32 = arith.constant 0 : i32
    %c0_i32_0 = arith.constant 0 : i32
    %c0_i32_1 = arith.constant 0 : i32
    return %c0_i32, %c0_i32_0 : i32, i32
  }
  func.func @transform_4(%arg0: i32) -> (i32, i32) {
    %c0_i32 = arith.constant 0 : i32
    %c0_i32_0 = arith.constant 0 : i32
    %c0_i32_1 = arith.constant 0 : i32
    return %c0_i32, %c0_i32_0 : i32, i32
  }
  func.func @transform_5(%arg0: i32) -> (i32, i32) {
    %c0_i32 = arith.constant 0 : i32
    %c0_i32_0 = arith.constant 0 : i32
    return %arg0, %c0_i32 : i32, i32
  }
}

</mosaic_0001>

<bundles_post_ra>
// kernel: residual_forward.1
= control target key start
LH: loop header
LB: loop body
LE: loop exit
PB: predicated region body
PF: predicated region fallthrough
CT: control target
= control target key end

     0   :  { %10 = vsyncpa [#allocation3], 0  ;;  %s849_s0 = inlined_call_operand.hbm [shape: f32[16,128], index: 0, kind: input, shape index: {}]   ;;  %s850_s1 = inlined_call_operand.hbm [shape: f32[128,128], index: 1, kind: input, shape index: {}]   ;;  %s851_s2 = inlined_call_operand.hbm [shape: f32[1,128], index: 2, kind: input, shape index: {}]   ;;  %s852_s3 = inlined_call_operand.hbm [shape: f32[128,128], index: 3, kind: input, shape index: {}]   ;;  %s853_s4 = inlined_call_operand.hbm [shape: f32[1,128], index: 4, kind: input, shape index: {}]   ;;  %s854_s5 = inlined_call_operand.hbm [shape: f32[16,128], index: 5, kind: output, shape index: {}]  }
   0x1   :  { %11 = vsyncpa [#allocation6], 0 }
   0x2   :  { %12 = vsyncpa [#allocation9], 0 }
   0x3   :  { %13 = vsyncpa [#allocation4], 0  ;;  %s710_s18 = smov [#allocation5]   ;;  %s711_s20 = smov [#allocation8]  }
   0x4   :  { %s31_s19 = sshll.u32 %s710_s18, 4  ;;  %s53_s21 = sshll.u32 %s711_s20, 4  ;;  %s32_s19 = int_to_ptr.vmem [resolvable:$true] %s31_s19  ;;  %s748_s21 = int_to_ptr.vmem [resolvable:$true] %s53_s21 }
   0x5   :  { %s570_s24 = scalar_lea.hbm %s850_s1, 2048 }
   0x6   :  { %p571_p0 = scmp.ne.s32.totalorder %s850_s1, %s570_s24  ;;  %p574_p1 = scmp.lt.u32.totalorder %s570_s24, %s850_s1 }
   0x8   :  { %p576_p2 = pnand %p574_p1, %p571_p0 }
   0xa   :  { %579 = shalt.err (!%p576_p2)
}
   0xb   :  { %s580_s29 = scalar_lea.vmem %s32_s19, 2048  ;;  %p585_p4 = scmp.lt.s32.totalorder %s32_s19, %s32_s19 }
   0xc   :  { %p581_p3 = scmp.ne.s32.totalorder %s32_s19, %s580_s29  ;;  %p586_p5 = scmp.lt.s32.totalorder %s580_s29, %s580_s29 }
   0xe   :  { %p587_p6 = por %p586_p5, %p585_p4 }
  0x10   :  { %p588_p7 = pnand %p587_p6, %p581_p3 }
  0x12   :  { %591 = shalt.err (!%p588_p7)
}
  0x13   :  { %s712_s30 = smov 128   ;;  %s713_s6 = smov 8  }
  0x14   :  { %37 = dma.hbm_to_vmem [thread:$0]  %s850_s1, 2048, %s32_s19, [#allocation6], %s712_s30, %s712_s30, %s713_s6  }
  0x15   :  { %s592_s11 = scalar_lea.hbm %s852_s3, 2048 }
  0x16   :  { %p593_p8 = scmp.ne.s32.totalorder %s852_s3, %s592_s11  ;;  %p596_p9 = scmp.lt.u32.totalorder %s592_s11, %s852_s3 }
  0x18   :  { %p598_p10 = pnand %p596_p9, %p593_p8 }
  0x1a   :  { %601 = shalt.err (!%p598_p10)
}
  0x1b   :  { %s602_s16 = scalar_lea.vmem %s748_s21, 2048  ;;  %p607_p12 = scmp.lt.s32.totalorder %s748_s21, %s748_s21 }
  0x1c   :  { %p603_p11 = scmp.ne.s32.totalorder %s748_s21, %s602_s16  ;;  %p608_p13 = scmp.lt.s32.totalorder %s602_s16, %s602_s16 }
  0x1e   :  { %p609_p0 = por %p608_p13, %p607_p12 }
  0x20   :  { %p610_p1 = pnand %p609_p0, %p603_p11 }
  0x22   :  { %613 = shalt.err (!%p610_p1)
}
  0x23   :  { %59 = dma.hbm_to_vmem [thread:$0]  %s852_s3, 2048, %s748_s21, [#allocation9], %s712_s30, %s712_s30, %s713_s6  }
  0x24   :  { %s714_s18 = smov [#allocation2]   ;;  %s715_s20 = smov [#allocation7]  }
  0x25   :  { %s19_s19 = sshll.u32 %s714_s18, 4  ;;  %s44_s22 = sshll.u32 %s715_s20, 4  ;;  %s20_s19 = int_to_ptr.vmem [resolvable:$true] %s19_s19  ;;  %s45_s22 = int_to_ptr.vmem [resolvable:$true] %s44_s22 }
  0x26   :  { %s614_s25 = scalar_lea.hbm %s849_s0, 256 }
  0x27   :  { %p615_p2 = scmp.ne.s32.totalorder %s849_s0, %s614_s25  ;;  %p618_p3 = scmp.lt.u32.totalorder %s614_s25, %s849_s0 }
  0x29   :  { %p620_p4 = pnand %p618_p3, %p615_p2 }
  0x2b   :  { %623 = shalt.err (!%p620_p4)
}
  0x2c   :  { %s624_s3 = scalar_lea.vmem %s20_s19, 256  ;;  %p629_p6 = scmp.lt.s32.totalorder %s20_s19, %s20_s19 }
  0x2d   :  { %p625_p5 = scmp.ne.s32.totalorder %s20_s19, %s624_s3  ;;  %p630_p7 = scmp.lt.s32.totalorder %s624_s3, %s624_s3 }
  0x2f   :  { %p631_p8 = por %p630_p7, %p629_p6 }
  0x31   :  { %p632_p9 = pnand %p631_p8, %p625_p5 }
  0x33   :  { %635 = shalt.err (!%p632_p9)
}
  0x34   :  { %25 = dma.hbm_to_vmem [thread:$0]  %s849_s0, 256, %s20_s19, [#allocation3], %s712_s30, %s712_s30, %s713_s6  }
  0x35   :  { %s636_s10 = scalar_lea.hbm %s851_s2, 16 }
  0x36   :  { %p637_p10 = scmp.ne.s32.totalorder %s851_s2, %s636_s10  ;;  %p640_p11 = scmp.lt.u32.totalorder %s636_s10, %s851_s2 }
  0x38   :  { %p642_p12 = pnand %p640_p11, %p637_p10 }
  0x3a   :  { %645 = shalt.err (!%p642_p12)
}
  0x3b   :  { %s646_s15 = scalar_lea.vmem %s45_s22, 16  ;;  %s650_s16 = scalar_lea.vmem %s45_s22, 32 }
  0x3c   :  { %p647_p13 = scmp.ne.s32.totalorder %s45_s22, %s646_s15  ;;  %p651_p0 = scmp.lt.s32.totalorder %s45_s22, %s45_s22 }
  0x3d   :  { %p652_p1 = scmp.lt.s32.totalorder %s650_s16, %s646_s15 }
  0x3f   :  { %p653_p2 = por %p652_p1, %p651_p0 }
  0x41   :  { %p654_p3 = pnand %p653_p2, %p647_p13 }
  0x43   :  { %657 = shalt.err (!%p654_p3)
}
  0x44   :  { %47 = dma.hbm_to_vmem [thread:$0]  %s851_s2, 16, %s45_s22, [#allocation6]  }
  0x45   :  { %s716_s17 = smov [#allocation10]   ;;  %s658_s23 = scalar_lea.hbm %s853_s4, 16 }
  0x46   :  { %s66_s18 = sshll.u32 %s716_s17, 4  ;;  %p659_p4 = scmp.ne.s32.totalorder %s853_s4, %s658_s23  ;;  %s67_s18 = int_to_ptr.vmem [resolvable:$true] %s66_s18 }
  0x47   :  { %p662_p5 = scmp.lt.u32.totalorder %s658_s23, %s853_s4 }
  0x49   :  { %p664_p6 = pnand %p662_p5, %p659_p4 }
  0x4b   :  { %667 = shalt.err (!%p664_p6)
}
  0x4c   :  { %s668_s28 = scalar_lea.vmem %s67_s18, 16  ;;  %s672_s2 = scalar_lea.vmem %s67_s18, 32 }
  0x4d   :  { %p669_p7 = scmp.ne.s32.totalorder %s67_s18, %s668_s28  ;;  %p673_p8 = scmp.lt.s32.totalorder %s67_s18, %s67_s18 }
  0x4e   :  { %p674_p9 = scmp.lt.s32.totalorder %s672_s2, %s668_s28 }
  0x50   :  { %p675_p10 = por %p674_p9, %p673_p8 }
  0x52   :  { %p676_p11 = pnand %p675_p10, %p669_p7 }
  0x54   :  { %679 = shalt.err (!%p676_p11)
}
  0x55   :  { %69 = dma.hbm_to_vmem [thread:$0]  %s853_s4, 16, %s67_s18, [#allocation9]  }
  0x56   :  { %702 = dma.done.wait [#allocation3], 256  }
  0x57   :  { %703 = vsyncadd [#allocation3], 4294967040 }
  0x58   :  { %704 = dma.done.wait [#allocation6], 2064  }
  0x59   :  { %705 = vsyncadd [#allocation6], 4294965232 }
  0x5a   :  { %706 = dma.done.wait [#allocation9], 2064  }
  0x5b   :  { %707 = vsyncadd [#allocation9], 4294965232  ;;  %v119_v0 = vld [vmem:[#allocation5] sm:$0xff]  ;;  %v120_v1 = vld [vmem:[#allocation5 + $0x8] sm:$0xff]  ;;  %s717_s4 = smov [#allocation11]  }
  0x5c   :  { %v121_v2 = vld [vmem:[#allocation5 + $0x10] sm:$0xff]  ;;  %v482_v3 = vpack.c.bf16 %v120_v1, %v119_v0  ;;  %v122_v4 = vld [vmem:[#allocation5 + $0x18] sm:$0xff]  ;;  %v123_v6 = vld [vmem:[#allocation5 + $0x20] sm:$0xff]  ;;  %s356_s3 = sshll.u32 %s717_s4, 4  ;;  %s357_s3 = int_to_ptr.vmem [resolvable:$true] %s356_s3 }
  0x5d   :  { %v486_v5 = vpack.c.bf16 %v122_v4, %v121_v2  ;;  %v124_v7 = vld [vmem:[#allocation5 + $0x28] sm:$0xff]  ;;  %v824_v9 = vld [vmem:[#allocation2] sm:$0xff]  ;;  %v826_v10 = vld [vmem:[#allocation2 + $0x8] sm:$0xff]  ;;  %s680_s21 = scalar_lea.vmem %s357_s3, 256  ;;  %p685_p13 = scmp.lt.s32.totalorder %s357_s3, %s357_s3 }
  0x5e   :  { %483 = vmatprep.subr.bf16.mxu0 %v482_v3  ;;  %v490_v8 = vpack.c.bf16 %v124_v7, %v123_v6  ;;  %v125_v11 = vld [vmem:[#allocation5 + $0x30] sm:$0xff]  ;;  %v126_v12 = vld [vmem:[#allocation5 + $0x38] sm:$0xff]  ;;  %v89_v13 = vand.u32 2147483647, %v824_v9  ;;  %v90_v14 = vand.u32 2147483647, %v826_v10  ;;  %p681_p12 = scmp.ne.s32.totalorder %s357_s3, %s680_s21  ;;  %p686_p0 = scmp.lt.s32.totalorder %s680_s21, %s680_s21 }
  0x5f   :  { %485 = vmatpush3.bf16.msra.mxu0 %v482_v3  ;;  %v494_v16 = vpack.c.bf16 %v126_v12, %v125_v11  ;;  %v127_v18 = vld [vmem:[#allocation5 + $0x40] sm:$0xff]  ;;  %v128_v19 = vld [vmem:[#allocation5 + $0x48] sm:$0xff]  ;;  %v129_v23 = vld [vmem:[#allocation5 + $0x50] sm:$0xff]  ;;  %v87_v44 = vmax.f32 %v824_v9, 0.0  ;;  %v88_v48 = vmax.f32 %v826_v10, 0.0 }
  0x60   :  { %487 = vmatprep.subr.bf16.mxu0 %v486_v5  ;;  %v91_v15 = vsub.f32 0.0, %v89_v13  ;;  %v92_v17 = vsub.f32 0.0, %v90_v14  ;;  %v498_v22 = vpack.c.bf16 %v128_v19, %v127_v18  ;;  %v130_v24 = vld [vmem:[#allocation5 + $0x58] sm:$0xff]  ;;  %v131_v26 = vld [vmem:[#allocation5 + $0x60] sm:$0xff]  ;;  %v132_v27 = vld [vmem:[#allocation5 + $0x68] sm:$0xff]  ;;  %p687_p1 = por %p686_p0, %p685_p13 }
  0x61   :  { %v502_v25 = vpack.c.bf16 %v130_v24, %v129_v23  ;;  %v506_v28 = vpack.c.bf16 %v132_v27, %v131_v26  ;;  %v133_v30 = vld [vmem:[#allocation5 + $0x70] sm:$0xff]  ;;  %v134_v31 = vld [vmem:[#allocation5 + $0x78] sm:$0xff]  ;;  %v249_v56 = vld [vmem:[#allocation8] sm:$0xff] }
  0x62   :  { %v93_v20 = vmul.f32 1.442695, %v91_v15  ;;  %v95_v21 = vmul.f32 1.442695, %v92_v17  ;;  %v510_v35 = vpack.c.bf16 %v134_v31, %v133_v30  ;;  %v250_v57 = vld [vmem:[#allocation8 + $0x8] sm:$0xff]  ;;  %v251_v59 = vld [vmem:[#allocation8 + $0x10] sm:$0xff]  ;;  %p688_p2 = pnand %p687_p1, %p681_p12 }
  0x63   :  { %489 = vmatpush3.bf16.msra.mxu0 %v486_v5  ;;  %v514_v58 = vpack.c.bf16 %v250_v57, %v249_v56  ;;  %v252_v60 = vld [vmem:[#allocation8 + $0x18] sm:$0xff]  ;;  %v253_v61 = vld [vmem:[#allocation8 + $0x20] sm:$0xff]  ;;  %v254_v63 = vld [vmem:[#allocation8 + $0x28] sm:$0xff] }
  0x64   :  { %491 = vmatprep.subr.bf16.mxu0 %v490_v8  ;;  %554 = vpow2.f32 %v93_v20  ;;  %v518_v62 = vpack.c.bf16 %v252_v60, %v251_v59  ;;  %v522_v0 = vpack.c.bf16 %v254_v63, %v253_v61  ;;  %v255_v1 = vld [vmem:[#allocation8 + $0x30] sm:$0xff]  ;;  %v256_v2 = vld [vmem:[#allocation8 + $0x38] sm:$0xff]  ;;  %v257_v4 = vld [vmem:[#allocation8 + $0x40] sm:$0xff] }
  0x65   :  { %556 = vpow2.f32 %v95_v21  ;;  %515 = vmatprep.subr.bf16.mxu1 %v514_v58  ;;  %v526_v3 = vpack.c.bf16 %v256_v2, %v255_v1  ;;  %v258_v5 = vld [vmem:[#allocation8 + $0x48] sm:$0xff]  ;;  %v259_v7 = vld [vmem:[#allocation8 + $0x50] sm:$0xff]  ;;  %v261_v12 = vld [vmem:[#allocation8 + $0x60] sm:$0xff] }
  0x66   :  { %517 = vmatpush3.bf16.msra.mxu1 %v514_v58  ;;  %v530_v6 = vpack.c.bf16 %v258_v5, %v257_v4  ;;  %v262_v13 = vld [vmem:[#allocation8 + $0x68] sm:$0xff]  ;;  %v263_v15 = vld [vmem:[#allocation8 + $0x70] sm:$0xff]  ;;  %v372_v18 = vld [vmem:[#allocation7] ss:$0 sm:$0xff] }
  0x67   :  { %493 = vmatpush3.bf16.msra.mxu0 %v490_v8  ;;  %519 = vmatprep.subr.bf16.mxu1 %v518_v62  ;;  %v260_v8 = vld [vmem:[#allocation8 + $0x58] sm:$0xff]  ;;  %v538_v14 = vpack.c.bf16 %v262_v13, %v261_v12 }
  0x68   :  { %495 = vmatprep.subr.bf16.mxu0 %v494_v16  ;;  %v534_v11 = vpack.c.bf16 %v260_v8, %v259_v7 }
  0x6a   :  { %521 = vmatpush3.bf16.msra.mxu1 %v518_v62 }
  0x6b   :  { %497 = vmatpush3.bf16.msra.mxu0 %v494_v16  ;;  %523 = vmatprep.subr.bf16.mxu1 %v522_v0  ;;  %v264_v16 = vld [vmem:[#allocation8 + $0x78] sm:$0xff] }
  0x6c   :  { %499 = vmatprep.subr.bf16.mxu0 %v498_v22  ;;  %v542_v17 = vpack.c.bf16 %v264_v16, %v263_v15 }
  0x6e   :  { %v555_v29 = vpop.eup %554  ;;  %525 = vmatpush3.bf16.msra.mxu1 %v522_v0 }
  0x6f   :  { %501 = vmatpush3.bf16.msra.mxu0 %v498_v22  ;;  %v557_v32 = vpop.eup %556  ;;  %v97_v33 = vadd.f32 1.0, %v555_v29  ;;  %v100_v36 = vmul.f32 -0.5, %v555_v29  ;;  %v103_v39 = vand.u32 2147483647, %v555_v29  ;;  %527 = vmatprep.subr.bf16.mxu1 %v526_v3 }
  0x70   :  { %503 = vmatprep.subr.bf16.mxu0 %v502_v25  ;;  %v106_v34 = vadd.f32 1.0, %v557_v32  ;;  %v109_v37 = vmul.f32 -0.5, %v557_v32  ;;  %v112_v41 = vand.u32 2147483647, %v557_v32 }
  0x71   :  { %558 = vlog2.f32 %v97_v33  ;;  %v101_v38 = vadd.f32 1.0, %v100_v36  ;;  %vm104_vm0 = vcmp.lt.f32.partialorder %v103_v39, 0.0004427343 }
  0x72   :  { %560 = vlog2.f32 %v106_v34  ;;  %v110_v40 = vadd.f32 1.0, %v109_v37  ;;  %vm113_vm1 = vcmp.lt.f32.partialorder %v112_v41, 0.0004427343  ;;  %529 = vmatpush3.bf16.msra.mxu1 %v526_v3 }
  0x73   :  { %505 = vmatpush3.bf16.msra.mxu0 %v502_v25  ;;  %v102_v42 = vmul.f32 %v555_v29, %v101_v38  ;;  %531 = vmatprep.subr.bf16.mxu1 %v530_v6 }
  0x74   :  { %507 = vmatprep.subr.bf16.mxu0 %v506_v28  ;;  %v111_v45 = vmul.f32 %v557_v32, %v110_v40 }
  0x76   :  { %533 = vmatpush3.bf16.msra.mxu1 %v530_v6 }
  0x77   :  { %509 = vmatpush3.bf16.msra.mxu0 %v506_v28  ;;  %535 = vmatprep.subr.bf16.mxu1 %v534_v11 }
  0x78   :  { %511 = vmatprep.subr.bf16.mxu0 %v510_v35 }
  0x7a   :  { %537 = vmatpush3.bf16.msra.mxu1 %v534_v11 }
  0x7b   :  { %513 = vmatpush3.bf16.msra.mxu0 %v510_v35  ;;  %v559_v43 = vpop.eup %558  ;;  %539 = vmatprep.subr.bf16.mxu1 %v538_v14 }
  0x7c   :  { %v561_v46 = vpop.eup %560  ;;  %v99_v47 = vmul.f32 0.6931472, %v559_v43 }
  0x7d   :  { %v108_v49 = vmul.f32 0.6931472, %v561_v46 }
  0x7e   :  { %v105_v50 = vsel %vm104_vm0, %v102_v42, %v99_v47  ;;  %541 = vmatpush3.bf16.msra.mxu1 %v538_v14 }
  0x7f   :  { %v115_v51 = vadd.f32 %v105_v50, %v87_v44  ;;  %v114_v52 = vsel %vm113_vm1, %v111_v45, %v108_v49  ;;  %543 = vmatprep.subr.bf16.mxu1 %v542_v17 }
  0x80   :  { %v116_v53 = vadd.f32 %v114_v52, %v88_v48 }
  0x81   :  { %v370_v54 = vadd.f32 -0.6931472, %v115_v51 }
  0x82   :  { %v371_v55 = vadd.f32 -0.6931472, %v116_v53  ;;  %545 = vmatpush3.bf16.msra.mxu1 %v542_v17  ;;  %v375_v53 = vld [vmem:[#allocation10] ss:$0 sm:$0xff] }
  0x83   :  { %444 = vmatprep.mubr.f32.mxu0 %v370_v54 }
  0x84   :  { %445 = vmatmul.mubr.f32.vlgmr.msra.gmra.mrb[0].mxu0 %v371_v55 }
 0x157   :  { %v446_v19 = vpop.f32.mrb[0].mxu0 }
 0x158   :  { %v214_v20 = vadd.f32 %v446_v19, %v372_v18  ;;  %v208_v21 = vpop.f32.mrb[1].mxu0 }
 0x159   :  { %v209_v22 = vadd.f32 %v372_v18, %v208_v21 }
 0x15a   :  { %v220_v23 = vand.u32 2147483647, %v214_v20  ;;  %v218_v43 = vmax.f32 %v214_v20, 0.0 }
 0x15b   :  { %v219_v24 = vand.u32 2147483647, %v209_v22  ;;  %v217_v46 = vmax.f32 %v209_v22, 0.0 }
 0x15c   :  { %v222_v25 = vsub.f32 0.0, %v220_v23 }
 0x15d   :  { %v221_v26 = vsub.f32 0.0, %v219_v24 }
 0x15e   :  { %v225_v27 = vmul.f32 1.442695, %v222_v25 }
 0x15f   :  { %v223_v28 = vmul.f32 1.442695, %v221_v26 }
 0x160   :  { %562 = vpow2.f32 %v225_v27 }
 0x161   :  { %564 = vpow2.f32 %v223_v28 }
 0x16a   :  { %v563_v29 = vpop.eup %562 }
 0x16b   :  { %v565_v30 = vpop.eup %564  ;;  %v236_v31 = vadd.f32 1.0, %v563_v29  ;;  %v239_v33 = vmul.f32 -0.5, %v563_v29  ;;  %v242_v37 = vand.u32 2147483647, %v563_v29 }
 0x16c   :  { %v227_v32 = vadd.f32 1.0, %v565_v30  ;;  %v230_v34 = vmul.f32 -0.5, %v565_v30  ;;  %v233_v38 = vand.u32 2147483647, %v565_v30 }
 0x16d   :  { %566 = vlog2.f32 %v236_v31  ;;  %v240_v35 = vadd.f32 1.0, %v239_v33  ;;  %vm243_vm2 = vcmp.lt.f32.partialorder %v242_v37, 0.0004427343 }
 0x16e   :  { %568 = vlog2.f32 %v227_v32  ;;  %v231_v36 = vadd.f32 1.0, %v230_v34  ;;  %vm234_vm3 = vcmp.lt.f32.partialorder %v233_v38, 0.0004427343 }
 0x16f   :  { %v241_v42 = vmul.f32 %v563_v29, %v240_v35 }
 0x170   :  { %v232_v45 = vmul.f32 %v565_v30, %v231_v36 }
 0x177   :  { %v567_v39 = vpop.eup %566 }
 0x178   :  { %v569_v40 = vpop.eup %568  ;;  %v238_v41 = vmul.f32 0.6931472, %v567_v39 }
 0x179   :  { %v229_v44 = vmul.f32 0.6931472, %v569_v40 }
 0x17a   :  { %v244_v47 = vsel %vm243_vm2, %v241_v42, %v238_v41 }
 0x17b   :  { %v235_v48 = vsel %vm234_vm3, %v232_v45, %v229_v44  ;;  %v246_v49 = vadd.f32 %v244_v47, %v218_v43 }
 0x17c   :  { %v245_v50 = vadd.f32 %v235_v48, %v217_v46 }
 0x17d   :  { %v374_v52 = vadd.f32 -0.6931472, %v246_v49 }
 0x17e   :  { %v373_v51 = vadd.f32 -0.6931472, %v245_v50 }
 0x180   :  { %479 = vmatprep.mubr.f32.mxu1 %v373_v51 }
 0x181   :  { %480 = vmatmul.mubr.f32.vlgmr.msra.gmra.mrb[0].mxu1 %v374_v52 }
 0x254   :  { %v481_v54 = vpop.f32.mrb[0].mxu1 }
 0x255   :  { %v344_v55 = vadd.f32 %v481_v54, %v375_v53  ;;  %v338_v56 = vpop.f32.mrb[1].mxu1 }
 0x256   :  { %v339_v57 = vadd.f32 %v375_v53, %v338_v56 }
 0x257   :  { %v348_v58 = vadd.f32 %v344_v55, %v826_v10 }
 0x258   :  { %v347_v59 = vadd.f32 %v339_v57, %v824_v9 }
 0x259   :  { %350 = vst [vmem:[#allocation11 + $0x8] sm:$0xff] %v348_v58 }
 0x25a   :  { %349 = vst [vmem:[#allocation11] sm:$0xff] %v347_v59 }
 0x25b   :  { %691 = shalt.err (!%p688_p2)
}
 0x25c   :  { %s692_s9 = scalar_lea.hbm %s854_s5, 256 }
 0x25d   :  { %p693_p3 = scmp.ne.s32.totalorder %s854_s5, %s692_s9  ;;  %p696_p4 = scmp.lt.u32.totalorder %s692_s9, %s854_s5 }
 0x25f   :  { %p698_p5 = pnand %p696_p4, %p693_p3 }
 0x261   :  { %701 = shalt.err (!%p698_p5)
}
 0x262   :  { %362 = dma.vmem_to_hbm [thread:$0]  %s357_s3, 256, %s854_s5, [#allocation4], %s712_s30, %s712_s30, %s713_s6  }
 0x263   :  { %708 = dma.done.wait [#allocation4], 256  }
 0x264   :  { %709 = vsyncadd [#allocation4], 4294967040 }
 0x265   :  { %366 = vsyncpa [#allocation3], 1 }
 0x266   :  { %367 = vsyncpa [#allocation6], 1 }
 0x267   :  { %368 = vsyncpa [#allocation9], 1 }
 0x268   :  { %369 = vsyncpa [#allocation4], 1 }

</bundles_post_ra>
